<compile_context>
chip_gen: v7x
topology: tpu7x:2x2x1
jax: 0.10.0
libtpu: 0.0.40
codegen_flags: <defaults>
</compile_context>

<pallas_src>
import functools

import jax
import jax.numpy as jnp
from jax.experimental import pallas as pl
from jax.experimental.pallas import tpu as pltpu


# Padded widths: every matmul operand's last dim is 128 -> lane-dense, no
# masked vst tails.  (Padded weight/bias lanes are zero, so padded channels
# stay exactly zero through SiLU and downstream contractions.)
K_PAD = 128    # im2col columns: 3*3*cin = 27 real
C1_PAD = 128   # stem channels: 32 real
F_PAD = 128    # head / classifier hidden: 64 real
NC_PAD = 128   # classes: 5 real


# ----------------------------------------------------------------------------
# Kernel 1: stem conv (single im2col GEMM) + SiLU + 1x1 head + SiLU + avg-pool.
# One grid step = IMG_BLK images; grid axis is "parallel" (megacore on v7x).
# ----------------------------------------------------------------------------
def _stem_head_pool_kernel(patch_ref, ws_ref, bs_ref, wh_ref, bh_ref,
                           pooled_ref, *, img_blk, m):
    # Stem 3x3 / stride-2 conv == ONE GEMM over the packed patch matrix.
    x = jnp.dot(patch_ref[...], ws_ref[...],
                preferred_element_type=jnp.float32) + bs_ref[...]
    x = x * jax.nn.sigmoid(x)                                    # SiLU (f32)
    # NOTE: sigmoid runs on padded lanes too (32/64 real of 128); only worth
    # slicing if the bundle ever shows EUP saturating before the MXU.

    # 1x1 conv head + SiLU.
    x = jnp.dot(x.astype(jnp.bfloat16), wh_ref[...],
                preferred_element_type=jnp.float32) + bh_ref[...]
    x = x * jax.nn.sigmoid(x)                                    # [blk_rows, F_PAD]

    # Global average pool per image (m spatial positions each).
    fp = x.shape[-1]
    pooled = x.reshape(img_blk, m, fp).sum(axis=1) * (1.0 / m)   # [img_blk, F_PAD]
    pooled_ref[...] = pooled.astype(pooled_ref.dtype)


# ----------------------------------------------------------------------------
# Kernel 2: classifier, hoisted out of the per-image loop (whole batch at once)
# ----------------------------------------------------------------------------
def _classifier_kernel(pooled_ref, w1_ref, b1_ref, w2_ref, b2_ref, o_ref):
    h = jnp.dot(pooled_ref[...].astype(jnp.bfloat16), w1_ref[...],
                preferred_element_type=jnp.float32) + b1_ref[...]
    h = jnp.maximum(h, 0.0)                                      # ReLU
    # Dropout(0.5) is identity in eval mode.
    logits = jnp.dot(h.astype(jnp.bfloat16), w2_ref[...],
                     preferred_element_type=jnp.float32) + b2_ref[...]
    o_ref[...] = logits.astype(o_ref.dtype)                      # [B, NC_PAD]


# ----------------------------------------------------------------------------
# One-time parameter preprocessing: torch layouts -> padded, lane-aligned.
# ----------------------------------------------------------------------------
def prepare_params(raw, *, kpad=K_PAD, c1p=C1_PAD, fp=F_PAD, ncp=NC_PAD):
    oc, cin, kh, kw = raw["w_stem"].shape
    kdim = kh * kw * cin
    assert kdim <= kpad and oc <= c1p

    def pad2(a, rows, cols):
        return jnp.zeros((rows, cols), jnp.float32).at[:a.shape[0], :a.shape[1]].set(a)

    def pad_bias(b, cols):
        return jnp.zeros((1, cols), jnp.float32).at[0, :b.shape[0]].set(b)

    # stem conv: torch [OC, C, KH, KW] -> im2col weight [KH*KW*C (pad), OC (pad)]
    # Row order (ki*KW + kj)*C + c matches the wrapper's tap concatenation.
    w_stem = jnp.transpose(raw["w_stem"], (2, 3, 1, 0)).reshape(kdim, oc)
    w_stem = pad2(w_stem, kpad, c1p)
    # 1x1 conv head: torch [F, OC, 1, 1] -> [OC (pad), F (pad)]
    w_head = pad2(raw["w_conv_head"][:, :, 0, 0].T, c1p, fp)
    # classifier Linears: torch [out, in] -> [in (pad), out (pad)]
    w_fc1 = pad2(raw["w_fc1"].T, fp, fp)
    w_fc2 = pad2(raw["w_fc2"].T, fp, ncp)

    return {
        "w_stem": w_stem.astype(jnp.bfloat16),
        "b_stem": pad_bias(raw["b_stem"], c1p),
        "w_head": w_head.astype(jnp.bfloat16),
        "b_head": pad_bias(raw["b_conv_head"], fp),
        "w_fc1": w_fc1.astype(jnp.bfloat16),
        "b_fc1": pad_bias(raw["b_fc1"], fp),
        "w_fc2": w_fc2.astype(jnp.bfloat16),
        "b_fc2": pad_bias(raw["b_fc2"], ncp),
    }


def _choose_img_blk(bsz, m, row_cap=512):
    """Largest divisor of bsz with img_blk*m <= row_cap and (when bsz > 1)
    at least 2 grid steps, so v7x's two TensorCores both get work."""
    best = 1
    for d in range(1, bsz + 1):
        if bsz % d:
            continue
        if d * m > row_cap:
            continue
        if bsz // d >= 2 or bsz == 1:
            best = d
    return best


# ----------------------------------------------------------------------------
# Forward pass (eval mode)
# ----------------------------------------------------------------------------
def custom_effnet_forward(images, prep, *, num_classes):
    bsz, cin, h, w = images.shape
    assert h % 2 == 0 and w % 2 == 0
    ho, wo = h // 2, w // 2
    m = ho * wo
    assert m % 8 == 0, "spatial positions per image must be a sublane multiple"

    kpad, c1p = prep["w_stem"].shape
    fp = prep["w_head"].shape[1]
    ncp = prep["w_fc2"].shape[1]

    # ---- im2col in the wrapper: lane-dense bf16 patch matrix [B*m, K_PAD] ---
    x = jnp.transpose(images, (0, 2, 3, 1))                      # NHWC
    xp = jnp.pad(x, ((0, 0), (1, 1), (1, 1), (0, 0)))
    taps = [xp[:, ki:ki + 2 * ho:2, kj:kj + 2 * wo:2, :]
            for ki in range(3) for kj in range(3)]
    patches = jnp.concatenate(taps, axis=-1)                     # [B, ho, wo, 9*cin]
    patches = patches.reshape(bsz, m, 9 * cin)
    patches = jnp.pad(patches, ((0, 0), (0, 0), (0, kpad - 9 * cin)))
    patches = patches.reshape(bsz * m, kpad).astype(jnp.bfloat16)

    # ---- batch blocking ------------------------------------------------------
    img_blk = _choose_img_blk(bsz, m)
    num_blk = bsz // img_blk
    blk_rows = img_blk * m

    # ---- VMEM budget from actual buffer math (double-buffered blocks) -------
    bytes_patch = blk_rows * kpad * 2                            # bf16 input block
    bytes_out = img_blk * fp * 4                                 # f32 pooled block
    bytes_wts = (kpad * c1p + c1p * fp) * 2 + (c1p + fp) * 4     # bf16 W + f32 b
    bytes_act = blk_rows * (c1p + fp) * 4                        # f32 intermediates
    vmem_need = 2 * (bytes_patch + bytes_out + bytes_wts) + bytes_act
    vmem_limit = int(min(max(2 * vmem_need, 8 * 1024 * 1024), 48 * 1024 * 1024))

    def full_spec(shape):
        n = len(shape)
        return pl.BlockSpec(shape, lambda i, _n=n: (0,) * _n)

    feat_kernel = functools.partial(_stem_head_pool_kernel, img_blk=img_blk, m=m)

    pooled = pl.pallas_call(
        feat_kernel,
        out_shape=jax.ShapeDtypeStruct((num_blk, img_blk, fp), jnp.float32),
        grid=(num_blk,),
        in_specs=[
            pl.BlockSpec((blk_rows, kpad), lambda i: (i, 0)),
            full_spec(prep["w_stem"].shape),
            full_spec(prep["b_stem"].shape),
            full_spec(prep["w_head"].shape),
            full_spec(prep["b_head"].shape),
        ],
        out_specs=pl.BlockSpec((None, img_blk, fp), lambda i: (i, 0, 0)),
        compiler_params=pltpu.CompilerParams(
            dimension_semantics=("parallel",),      # v7x: 2 TCs split the steps
            vmem_limit_bytes=vmem_limit,
        ),
    )(patches, prep["w_stem"], prep["b_stem"], prep["w_head"], prep["b_head"])

    pooled = pooled.reshape(bsz, fp)                             # contiguous

    # ---- classifier once for the whole batch --------------------------------
    logits_padded = pl.pallas_call(
        _classifier_kernel,
        out_shape=jax.ShapeDtypeStruct((bsz, ncp), jnp.float32),
        grid=(1,),
        in_specs=[
            pl.BlockSpec((bsz, fp), lambda i: (0, 0)),
            full_spec(prep["w_fc1"].shape),
            full_spec(prep["b_fc1"].shape),
            full_spec(prep["w_fc2"].shape),
            full_spec(prep["b_fc2"].shape),
        ],
        out_specs=pl.BlockSpec((bsz, ncp), lambda i: (0, 0)),
        compiler_params=pltpu.CompilerParams(
            vmem_limit_bytes=4 * 1024 * 1024,
        ),
    )(pooled, prep["w_fc1"], prep["b_fc1"], prep["w_fc2"], prep["b_fc2"])

    return logits_padded[:, :num_classes]


# ----------------------------------------------------------------------------
# Pure-JAX reference (f32) for correctness checking
# ----------------------------------------------------------------------------
def reference_forward(images, raw):
    x = jnp.transpose(images, (0, 2, 3, 1)).astype(jnp.float32)
    xp = jnp.pad(x, ((0, 0), (1, 1), (1, 1), (0, 0)))
    ho, wo = images.shape[2] // 2, images.shape[3] // 2
    wst = jnp.transpose(raw["w_stem"], (2, 3, 1, 0))             # [3,3,C,OC]
    acc = 0.0
    for ki in range(3):
        for kj in range(3):
            xk = xp[:, ki:ki + 2 * ho:2, kj:kj + 2 * wo:2, :]
            acc = acc + jnp.einsum("bhwc,co->bhwo", xk, wst[ki, kj])
    s = acc + raw["b_stem"]
    s = s * jax.nn.sigmoid(s)
    wh = raw["w_conv_head"][:, :, 0, 0].T                        # [OC, F]
    y = jnp.einsum("bhwc,cf->bhwf", s, wh) + raw["b_conv_head"]
    y = y * jax.nn.sigmoid(y)
    pooled = jnp.mean(y, axis=(1, 2))
    hdn = jnp.maximum(pooled @ raw["w_fc1"].T + raw["b_fc1"], 0.0)
    return hdn @ raw["w_fc2"].T + raw["b_fc2"]


# ----------------------------------------------------------------------------
# Main
# ----------------------------------------------------------------------------
if __name__ == "__main__":
    key = jax.random.PRNGKey(0)
    B, C, H, W = 2, 3, 16, 16          # NCHW images
    STEM_CH, IN_FEATURES, NUM_CLASSES = 32, 64, 5

    ks = jax.random.split(key, 9)
    images = jax.random.normal(ks[0], (B, C, H, W), jnp.float32)

    raw = {  # PyTorch-layout parameters
        "w_stem": 0.1 * jax.random.normal(ks[1], (STEM_CH, C, 3, 3), jnp.float32),
        "b_stem": 0.01 * jax.random.normal(ks[2], (STEM_CH,), jnp.float32),
        "w_conv_head": 0.1 * jax.random.normal(ks[3], (IN_FEATURES, STEM_CH, 1, 1), jnp.float32),
        "b_conv_head": 0.01 * jax.random.normal(ks[4], (IN_FEATURES,), jnp.float32),
        "w_fc1": 0.1 * jax.random.normal(ks[5], (IN_FEATURES, IN_FEATURES), jnp.float32),
        "b_fc1": 0.01 * jax.random.normal(ks[6], (IN_FEATURES,), jnp.float32),
        "w_fc2": 0.1 * jax.random.normal(ks[7], (NUM_CLASSES, IN_FEATURES), jnp.float32),
        "b_fc2": 0.01 * jax.random.normal(ks[8], (NUM_CLASSES,), jnp.float32),
    }

    prep = prepare_params(raw)
    fwd = jax.jit(functools.partial(custom_effnet_forward, num_classes=NUM_CLASSES))
    logits = jax.block_until_ready(fwd(images, prep))

    assert logits.shape == (B, NUM_CLASSES), logits.shape
    assert bool(jnp.all(jnp.isfinite(logits)))

    ref = reference_forward(images, raw)
    err = float(jnp.max(jnp.abs(logits - ref)))
    assert bool(jnp.allclose(logits, ref, atol=5e-2, rtol=5e-2)), err

    print("KERNEL_OK")
</pallas_src>

<mosaic_0001>
module attributes {stable_mosaic.version = 11 : i64} {
  func.func @_classifier_kernel(%arg0: i32, %arg1: memref<2x128xf32, #tpu.memory_space<vmem>>, %arg2: memref<128x128xbf16, #tpu.memory_space<vmem>>, %arg3: memref<1x128xf32, #tpu.memory_space<vmem>>, %arg4: memref<128x128xbf16, #tpu.memory_space<vmem>>, %arg5: memref<1x128xf32, #tpu.memory_space<vmem>>, %arg6: memref<2x128xf32, #tpu.memory_space<vmem>>) attributes {dimension_semantics = [#tpu.dimension_semantics<arbitrary>], iteration_bounds = array<i64: 1>, scalar_prefetch = 0 : i64, scratch_operands = 0 : i64, tpu.core_type = #tpu.core_type<tc>, window_params = [{pipeline_mode = #tpu.pipeline_mode<synchronous>, transform_indices = @transform_0, window_bounds = array<i64: 2, 128>}, {pipeline_mode = #tpu.pipeline_mode<synchronous>, transform_indices = @transform_1, window_bounds = array<i64: 128, 128>}, {pipeline_mode = #tpu.pipeline_mode<synchronous>, transform_indices = @transform_2, window_bounds = array<i64: 1, 128>}, {pipeline_mode = #tpu.pipeline_mode<synchronous>, transform_indices = @transform_3, window_bounds = array<i64: 128, 128>}, {pipeline_mode = #tpu.pipeline_mode<synchronous>, transform_indices = @transform_4, window_bounds = array<i64: 1, 128>}, {pipeline_mode = #tpu.pipeline_mode<synchronous>, transform_indices = @transform_5, window_bounds = array<i64: 2, 128>}]} {
    %c0 = arith.constant 0 : index
    %c0_0 = arith.constant 0 : index
    %0 = vector.load %arg1[%c0, %c0_0] : memref<2x128xf32, #tpu.memory_space<vmem>>, vector<2x128xf32>
    %1 = arith.truncf %0 : vector<2x128xf32> to vector<2x128xbf16>
    %c0_1 = arith.constant 0 : index
    %c0_2 = arith.constant 0 : index
    %2 = vector.load %arg2[%c0_1, %c0_2] : memref<128x128xbf16, #tpu.memory_space<vmem>>, vector<128x128xbf16>
    %cst = arith.constant dense<0.000000e+00> : vector<2x128xf32>
    %3 = tpu.matmul %1, %2, %cst {dimension_numbers = #tpu.dot_dimension_numbers<[1], [0], [0], [1], [0, 0, 1, 1], [], []>} : vector<2x128xbf16>, vector<128x128xbf16>, vector<2x128xf32> -> vector<2x128xf32>
    %c0_3 = arith.constant 0 : index
    %c0_4 = arith.constant 0 : index
    %4 = vector.load %arg3[%c0_3, %c0_4] : memref<1x128xf32, #tpu.memory_space<vmem>>, vector<1x128xf32>
    %5 = vector.broadcast %4 : vector<1x128xf32> to vector<2x128xf32>
    %6 = arith.addf %3, %5 : vector<2x128xf32>
    %cst_5 = arith.constant 0.000000e+00 : f32
    %7 = vector.broadcast %cst_5 : f32 to vector<2x128xf32>
    %8 = arith.maximumf %6, %7 : vector<2x128xf32>
    %9 = arith.truncf %8 : vector<2x128xf32> to vector<2x128xbf16>
    %c0_6 = arith.constant 0 : index
    %c0_7 = arith.constant 0 : index
    %10 = vector.load %arg4[%c0_6, %c0_7] : memref<128x128xbf16, #tpu.memory_space<vmem>>, vector<128x128xbf16>
    %cst_8 = arith.constant dense<0.000000e+00> : vector<2x128xf32>
    %11 = tpu.matmul %9, %10, %cst_8 {dimension_numbers = #tpu.dot_dimension_numbers<[1], [0], [0], [1], [0, 0, 1, 1], [], []>} : vector<2x128xbf16>, vector<128x128xbf16>, vector<2x128xf32> -> vector<2x128xf32>
    %c0_9 = arith.constant 0 : index
    %c0_10 = arith.constant 0 : index
    %12 = vector.load %arg5[%c0_9, %c0_10] : memref<1x128xf32, #tpu.memory_space<vmem>>, vector<1x128xf32>
    %13 = vector.broadcast %12 : vector<1x128xf32> to vector<2x128xf32>
    %14 = arith.addf %11, %13 : vector<2x128xf32>
    %c0_11 = arith.constant 0 : index
    %c0_12 = arith.constant 0 : index
    %15 = vector.load %arg6[%c0_11, %c0_12] : memref<2x128xf32, #tpu.memory_space<vmem>>, vector<2x128xf32>
    tpu.vector_store %arg6[%c0_11, %c0_12], %14 {strides = array<i32>} : memref<2x128xf32, #tpu.memory_space<vmem>>, vector<2x128xf32>,
    return
  }
  func.func @transform_0(%arg0: i32) -> (i32, i32) {
    %c0_i32 = arith.constant 0 : i32
    %c0_i32_0 = arith.constant 0 : i32
    %c0_i32_1 = arith.constant 0 : i32
    return %c0_i32, %c0_i32_0 : i32, i32
  }
  func.func @transform_1(%arg0: i32) -> (i32, i32) {
    %c0_i32 = arith.constant 0 : i32
    %c0_i32_0 = arith.constant 0 : i32
    %c0_i32_1 = arith.constant 0 : i32
    return %c0_i32, %c0_i32_0 : i32, i32
  }
  func.func @transform_2(%arg0: i32) -> (i32, i32) {
    %c0_i32 = arith.constant 0 : i32
    %c0_i32_0 = arith.constant 0 : i32
    %c0_i32_1 = arith.constant 0 : i32
    return %c0_i32, %c0_i32_0 : i32, i32
  }
  func.func @transform_3(%arg0: i32) -> (i32, i32) {
    %c0_i32 = arith.constant 0 : i32
    %c0_i32_0 = arith.constant 0 : i32
    %c0_i32_1 = arith.constant 0 : i32
    return %c0_i32, %c0_i32_0 : i32, i32
  }
  func.func @transform_4(%arg0: i32) -> (i32, i32) {
    %c0_i32 = arith.constant 0 : i32
    %c0_i32_0 = arith.constant 0 : i32
    %c0_i32_1 = arith.constant 0 : i32
    return %c0_i32, %c0_i32_0 : i32, i32
  }
  func.func @transform_5(%arg0: i32) -> (i32, i32) {
    %c0_i32 = arith.constant 0 : i32
    %c0_i32_0 = arith.constant 0 : i32
    %c0_i32_1 = arith.constant 0 : i32
    return %c0_i32, %c0_i32_0 : i32, i32
  }
}

module attributes {stable_mosaic.version = 11 : i64} {
  func.func @_stem_head_pool_kernel(%arg0: i32, %arg1: memref<64x128xbf16, #tpu.memory_space<vmem>>, %arg2: memref<128x128xbf16, #tpu.memory_space<vmem>>, %arg3: memref<1x128xf32, #tpu.memory_space<vmem>>, %arg4: memref<128x128xbf16, #tpu.memory_space<vmem>>, %arg5: memref<1x128xf32, #tpu.memory_space<vmem>>, %arg6: memref<1x1x128xf32, #tpu.memory_space<vmem>>) attributes {dimension_semantics = [#tpu.dimension_semantics<parallel>], iteration_bounds = array<i64: 2>, scalar_prefetch = 0 : i64, scratch_operands = 0 : i64, tpu.core_type = #tpu.core_type<tc>, window_params = [{transform_indices = @transform_0, window_bounds = array<i64: 64, 128>}, {pipeline_mode = #tpu.pipeline_mode<synchronous>, transform_indices = @transform_1, window_bounds = array<i64: 128, 128>}, {pipeline_mode = #tpu.pipeline_mode<synchronous>, transform_indices = @transform_2, window_bounds = array<i64: 1, 128>}, {pipeline_mode = #tpu.pipeline_mode<synchronous>, transform_indices = @transform_3, window_bounds = array<i64: 128, 128>}, {pipeline_mode = #tpu.pipeline_mode<synchronous>, transform_indices = @transform_4, window_bounds = array<i64: 1, 128>}, {transform_indices = @transform_5, window_bounds = array<i64: 1, 1, 128>}]} {
    %c0 = arith.constant 0 : index
    %c0_0 = arith.constant 0 : index
    %0 = vector.load %arg1[%c0, %c0_0] : memref<64x128xbf16, #tpu.memory_space<vmem>>, vector<64x128xbf16>
    %c0_1 = arith.constant 0 : index
    %c0_2 = arith.constant 0 : index
    %1 = vector.load %arg2[%c0_1, %c0_2] : memref<128x128xbf16, #tpu.memory_space<vmem>>, vector<128x128xbf16>
    %cst = arith.constant dense<0.000000e+00> : vector<64x128xf32>
    %2 = tpu.matmul %0, %1, %cst {dimension_numbers = #tpu.dot_dimension_numbers<[1], [0], [0], [1], [0, 0, 1, 1], [], []>} : vector<64x128xbf16>, vector<128x128xbf16>, vector<64x128xf32> -> vector<64x128xf32>
    %c0_3 = arith.constant 0 : index
    %c0_4 = arith.constant 0 : index
    %3 = vector.load %arg3[%c0_3, %c0_4] : memref<1x128xf32, #tpu.memory_space<vmem>>, vector<1x128xf32>
    %4 = vector.broadcast %3 : vector<1x128xf32> to vector<64x128xf32>
    %5 = arith.addf %2, %4 : vector<64x128xf32>
    %6 = arith.negf %5 : vector<64x128xf32>
    %7 = math.exp %6 : vector<64x128xf32>
    %cst_5 = arith.constant 1.000000e+00 : f32
    %8 = vector.broadcast %cst_5 : f32 to vector<64x128xf32>
    %9 = arith.addf %8, %7 : vector<64x128xf32>
    %10 = arith.divf %8, %9 : vector<64x128xf32>
    %11 = arith.mulf %5, %10 : vector<64x128xf32>
    %12 = arith.truncf %11 : vector<64x128xf32> to vector<64x128xbf16>
    %c0_6 = arith.constant 0 : index
    %c0_7 = arith.constant 0 : index
    %13 = vector.load %arg4[%c0_6, %c0_7] : memref<128x128xbf16, #tpu.memory_space<vmem>>, vector<128x128xbf16>
    %cst_8 = arith.constant dense<0.000000e+00> : vector<64x128xf32>
    %14 = tpu.matmul %12, %13, %cst_8 {dimension_numbers = #tpu.dot_dimension_numbers<[1], [0], [0], [1], [0, 0, 1, 1], [], []>} : vector<64x128xbf16>, vector<128x128xbf16>, vector<64x128xf32> -> vector<64x128xf32>
    %c0_9 = arith.constant 0 : index
    %c0_10 = arith.constant 0 : index
    %15 = vector.load %arg5[%c0_9, %c0_10] : memref<1x128xf32, #tpu.memory_space<vmem>>, vector<1x128xf32>
    %16 = vector.broadcast %15 : vector<1x128xf32> to vector<64x128xf32>
    %17 = arith.addf %14, %16 : vector<64x128xf32>
    %18 = arith.negf %17 : vector<64x128xf32>
    %19 = math.exp %18 : vector<64x128xf32>
    %cst_11 = arith.constant 1.000000e+00 : f32
    %20 = vector.broadcast %cst_11 : f32 to vector<64x128xf32>
    %21 = arith.addf %20, %19 : vector<64x128xf32>
    %22 = arith.divf %20, %21 : vector<64x128xf32>
    %23 = arith.mulf %17, %22 : vector<64x128xf32>
    %24 = vector.shape_cast %23 : vector<64x128xf32> to vector<1x64x128xf32>
    %cst_12 = arith.constant dense<0.000000e+00> : vector<1x128xf32>
    %25 = vector.multi_reduction <add>, %24, %cst_12 [1] : vector<1x64x128xf32> to vector<1x128xf32>
    %cst_13 = arith.constant 1.562500e-02 : f32
    %26 = vector.broadcast %cst_13 : f32 to vector<1x128xf32>
    %27 = arith.mulf %25, %26 : vector<1x128xf32>
    %c0_14 = arith.constant 0 : index
    %c0_15 = arith.constant 0 : index
    %c0_16 = arith.constant 0 : index
    %28 = vector.load %arg6[%c0_14, %c0_15, %c0_16] : memref<1x1x128xf32, #tpu.memory_space<vmem>>, vector<1x1x128xf32>
    %29 = vector.shape_cast %28 : vector<1x1x128xf32> to vector<1x128xf32>
    %30 = vector.shape_cast %27 : vector<1x128xf32> to vector<1x1x128xf32>
    tpu.vector_store %arg6[%c0_14, %c0_15, %c0_16], %30 {strides = array<i32>} : memref<1x1x128xf32, #tpu.memory_space<vmem>>, vector<1x1x128xf32>,
    return
  }
  func.func @transform_0(%arg0: i32) -> (i32, i32) {
    %c0_i32 = arith.constant 0 : i32
    %c0_i32_0 = arith.constant 0 : i32
    return %arg0, %c0_i32 : i32, i32
  }
  func.func @transform_1(%arg0: i32) -> (i32, i32) {
    %c0_i32 = arith.constant 0 : i32
    %c0_i32_0 = arith.constant 0 : i32
    %c0_i32_1 = arith.constant 0 : i32
    return %c0_i32, %c0_i32_0 : i32, i32
  }
  func.func @transform_2(%arg0: i32) -> (i32, i32) {
    %c0_i32 = arith.constant 0 : i32
    %c0_i32_0 = arith.constant 0 : i32
    %c0_i32_1 = arith.constant 0 : i32
    return %c0_i32, %c0_i32_0 : i32, i32
  }
  func.func @transform_3(%arg0: i32) -> (i32, i32) {
    %c0_i32 = arith.constant 0 : i32
    %c0_i32_0 = arith.constant 0 : i32
    %c0_i32_1 = arith.constant 0 : i32
    return %c0_i32, %c0_i32_0 : i32, i32
  }
  func.func @transform_4(%arg0: i32) -> (i32, i32) {
    %c0_i32 = arith.constant 0 : i32
    %c0_i32_0 = arith.constant 0 : i32
    %c0_i32_1 = arith.constant 0 : i32
    return %c0_i32, %c0_i32_0 : i32, i32
  }
  func.func @transform_5(%arg0: i32) -> (i32, i32, i32) {
    %c0_i32 = arith.constant 0 : i32
    %c0_i32_0 = arith.constant 0 : i32
    %c0_i32_1 = arith.constant 0 : i32
    return %arg0, %c0_i32, %c0_i32_0 : i32, i32, i32
  }
}

</mosaic_0001>

<bundles_post_ra>
// kernel: custom_effnet_forward.2
= control target key start
LH: loop header
LB: loop body
LE: loop exit
PB: predicated region body
PF: predicated region fallthrough
CT: control target
= control target key end

     0   :  { %s955_s18 = smov 0   ;;  %s1031_s0 = inlined_call_operand.vmem [shape: bf16[128,128], index: 0, kind: input, shape index: {}]   ;;  %s1032_s1 = inlined_call_operand.vmem [shape: bf16[128,128], index: 1, kind: input, shape index: {}]   ;;  %s1033_s2 = inlined_call_operand.vmem [shape: f32[1,128], index: 2, kind: input, shape index: {}]   ;;  %s1034_s3 = inlined_call_operand.vmem [shape: bf16[128,128], index: 3, kind: input, shape index: {}]   ;;  %s1035_s4 = inlined_call_operand.vmem [shape: f32[1,128], index: 4, kind: input, shape index: {}]   ;;  %s1036_s5 = inlined_call_operand.vmem [shape: f32[2,1,128], index: 5, kind: output, shape index: {}]  }
   0x1 LB: > { %s961_s19 = sadd.s32 4294967295, %s923_s18   ;;  %p710_p0 = scmp.ge.s32.totalorder %s923_s18, 1  ;;  %s923_s18 = sphi %s955_s18, %s15_s18  }
   0x2   : > { %p188_p1 = scmp.lt.s32.totalorder %s923_s18, 3 }
   0x4   : > { %p189_p2 = pnand %p710_p0, %p188_p1 }
   0x5   : > { %v833_v0 = vld [vmem:[%s1032_s1] sm:$0xff] (!%p189_p2)   ;;  %s711_s22 = sshll.u32 (!%p189_p2), %s961_s19, 3  ;;  %v834_v1 = vld [vmem:[%s1032_s1 + $0x8] sm:$0xff] (!%p189_p2)   ;;  %v835_v2 = vld [vmem:[%s1032_s1 + $0x10] sm:$0xff] (!%p189_p2)   ;;  %p220_p4 = scmp.lt.s32.totalorder (!%p189_p2), %s961_s19, 1 }
   0x6   : > { %192 = sbr.rel (%p189_p2) target bundleno = 560 (0x230), region = 40  ;;  %p215_p3 = scmp.lt.s32.totalorder (!%p189_p2), %s711_s22, 15  ;;  %777 = vmatprep.subr.bf16.mxu0 (!%p189_p2), %v833_v0  ;;  %v836_v3 = vld [vmem:[%s1032_s1 + $0x18] sm:$0xff] (!%p189_p2)   ;;  %v837_v5 = vld [vmem:[%s1032_s1 + $0x20] sm:$0xff] (!%p189_p2)   ;;  %v838_v6 = vld [vmem:[%s1032_s1 + $0x28] sm:$0xff] (!%p189_p2)  }
   0x7   : > { %778 = vmatpush3.bf16.msra.mxu0 (!%p189_p2), %v833_v0  ;;  %v839_v7 = vld [vmem:[%s1032_s1 + $0x30] sm:$0xff] (!%p189_p2)   ;;  %v840_v8 = vld [vmem:[%s1032_s1 + $0x38] sm:$0xff] (!%p189_p2)   ;;  %v845_v12 = vld [vmem:[%s1034_s3] sm:$0xff] (!%p189_p2)  }
   0x8   : > { %779 = vmatprep.subr.bf16.mxu0 (!%p189_p2), %v834_v1  ;;  %801 = vmatprep.subr.bf16.mxu1 (!%p189_p2), %v845_v12  ;;  %v846_v13 = vld [vmem:[%s1034_s3 + $0x8] sm:$0xff] (!%p189_p2)   ;;  %v847_v14 = vld [vmem:[%s1034_s3 + $0x10] sm:$0xff] (!%p189_p2)   ;;  %v848_v15 = vld [vmem:[%s1034_s3 + $0x18] sm:$0xff] (!%p189_p2)  }
   0x9   : > { %802 = vmatpush3.bf16.msra.mxu1 (!%p189_p2), %v845_v12  ;;  %v849_v16 = vld [vmem:[%s1034_s3 + $0x20] sm:$0xff] (!%p189_p2)   ;;  %v850_v17 = vld [vmem:[%s1034_s3 + $0x28] sm:$0xff] (!%p189_p2)   ;;  %v851_v18 = vld [vmem:[%s1034_s3 + $0x30] sm:$0xff] (!%p189_p2)  }
   0xa   : > { %803 = vmatprep.subr.bf16.mxu1 (!%p189_p2), %v846_v13  ;;  %v852_v19 = vld [vmem:[%s1034_s3 + $0x38] sm:$0xff] (!%p189_p2)   ;;  %v713_v20 = vld [vmem:[%s1033_s2] ss:$0 sm:$0xff] (!%p189_p2) }
   0xb   : > { %780 = vmatpush3.bf16.msra.mxu0 (!%p189_p2), %v834_v1 }
   0xc   : > { %781 = vmatprep.subr.bf16.mxu0 (!%p189_p2), %v835_v2 }
   0xd   : > { %s1038_s22 = smov (!%p215_p3, %s711_s22), 15  ;;  %804 = vmatpush3.bf16.msra.mxu1 %v846_v13  ;;  %s1040_s19 = smov (!%p220_p4, %s961_s19), 1 }
   0xe   : > { %s712_s27 = sshll.u32 %s1038_s22, 2  ;;  %805 = vmatprep.subr.bf16.mxu1 %v847_v14  ;;  %s222_s15 = scalar_lea.vmem %s1036_s5, %s1040_s19 }
   0xf   : > { %s218_s30 = scalar_lea.vmem %s1031_s0, %s712_s27  ;;  %782 = vmatpush3.bf16.msra.mxu0 %v835_v2 }
  0x10   : > { %v841_v4 = vld [vmem:[%s218_s30] sm:$0xff]   ;;  %783 = vmatprep.subr.bf16.mxu0 %v836_v3  ;;  %v842_v9 = vld [vmem:[%s218_s30 + $0x8] sm:$0xff]   ;;  %v843_v10 = vld [vmem:[%s218_s30 + $0x10] sm:$0xff]  }
  0x11   : > { %793 = vmatprep.mubr.bf16.mxu0 %v841_v4  ;;  %v844_v11 = vld [vmem:[%s218_s30 + $0x18] sm:$0xff]   ;;  %806 = vmatpush3.bf16.msra.mxu1 %v847_v14 }
  0x12   : > { %807 = vmatprep.subr.bf16.mxu1 %v848_v15 }
  0x13   : > { %784 = vmatpush3.bf16.msra.mxu0 %v836_v3 }
  0x14   : > { %785 = vmatprep.subr.bf16.mxu0 %v837_v5 }
  0x15   : > { %808 = vmatpush3.bf16.msra.mxu1 %v848_v15 }
  0x16   : > { %809 = vmatprep.subr.bf16.mxu1 %v849_v16 }
  0x17   : > { %786 = vmatpush3.bf16.msra.mxu0 %v837_v5 }
  0x18   : > { %787 = vmatprep.subr.bf16.mxu0 %v838_v6 }
  0x19   : > { %810 = vmatpush3.bf16.msra.mxu1 %v849_v16 }
  0x1a   : > { %811 = vmatprep.subr.bf16.mxu1 %v850_v17 }
  0x1b   : > { %788 = vmatpush3.bf16.msra.mxu0 %v838_v6 }
  0x1c   : > { %789 = vmatprep.subr.bf16.mxu0 %v839_v7 }
  0x1d   : > { %812 = vmatpush3.bf16.msra.mxu1 %v850_v17  ;;  %v734_v17 = vld [vmem:[%s1035_s4] ss:$0 sm:$0xff] }
  0x1e   : > { %813 = vmatprep.subr.bf16.mxu1 %v851_v18 }
  0x1f   : > { %790 = vmatpush3.bf16.msra.mxu0 %v839_v7 }
  0x20   : > { %791 = vmatprep.subr.bf16.mxu0 %v840_v8 }
  0x21   : > { %814 = vmatpush3.bf16.msra.mxu1 %v851_v18 }
  0x22   : > { %815 = vmatprep.subr.bf16.mxu1 %v852_v19 }
  0x23   : > { %792 = vmatpush3.bf16.msra.mxu0 %v840_v8 }
  0x25   : > { %816 = vmatpush3.bf16.msra.mxu1 %v852_v19 }
  0x26   : > { %794 = vmatmul.mubr.bf16.vlgmr.msra.gmra.mrb[0].mxu0 %v842_v9 }
  0x27   : > { %797 = vmatprep.mubr.bf16.mxu0 %v843_v10 }
  0x2e   : > { %798 = vmatmul.mubr.bf16.gmra.mrb[4].mxu0 %v844_v11 }
  0xf9   : > { %v795_v21 = vpop.f32.mrb[0].mxu0 }
  0xfa   : > { %v370_v22 = vadd.f32 %v795_v21, %v713_v20  ;;  %v361_v23 = vpop.f32.mrb[1].mxu0 }
  0xfb   : > { %v362_v24 = vadd.f32 %v713_v20, %v361_v23  ;;  %v796_v25 = vpop.f32.mrb[2].mxu0 }
  0xfc   : > { %v728_v26 = vmul.f32 -1.442695, %v370_v22  ;;  %v373_v27 = vadd.f32 %v796_v25, %v713_v20  ;;  %v364_v28 = vpop.f32.mrb[3].mxu0 }
  0xfd   : > { %v726_v29 = vmul.f32 -1.442695, %v362_v24  ;;  %v365_v30 = vadd.f32 %v713_v20, %v364_v28 }
  0xfe   : > { %853 = vpow2.f32 %v728_v26  ;;  %v729_v31 = vmul.f32 -1.442695, %v373_v27 }
  0xff   : > { %855 = vpow2.f32 %v726_v29  ;;  %v727_v32 = vmul.f32 -1.442695, %v365_v30 }
 0x100   : > { %857 = vpow2.f32 %v729_v31 }
 0x101   : > { %859 = vpow2.f32 %v727_v32  ;;  %v799_v33 = vpop.f32.mrb[4].mxu0 }
 0x102   : > { %v386_v34 = vadd.f32 %v799_v33, %v713_v20  ;;  %v377_v35 = vpop.f32.mrb[5].mxu0 }
 0x103   : > { %v378_v36 = vadd.f32 %v713_v20, %v377_v35  ;;  %v800_v37 = vpop.f32.mrb[6].mxu0 }
 0x104   : > { %v732_v38 = vmul.f32 -1.442695, %v386_v34  ;;  %v389_v39 = vadd.f32 %v800_v37, %v713_v20  ;;  %v380_v40 = vpop.f32.mrb[7].mxu0 }
 0x105   : > { %v730_v41 = vmul.f32 -1.442695, %v378_v36  ;;  %v381_v42 = vadd.f32 %v713_v20, %v380_v40 }
 0x106   : > { %861 = vpow2.f32 %v732_v38  ;;  %v733_v43 = vmul.f32 -1.442695, %v389_v39 }
 0x107   : > { %863 = vpow2.f32 %v730_v41  ;;  %v731_v44 = vmul.f32 -1.442695, %v381_v42 }
 0x108   : > { %v854_v45 = vpop.eup %853  ;;  %865 = vpow2.f32 %v733_v43 }
 0x109   : > { %v856_v46 = vpop.eup %855  ;;  %v418_v47 = vadd.f32 1.0, %v854_v45  ;;  %867 = vpow2.f32 %v731_v44 }
 0x10a   : > { %v858_v48 = vpop.eup %857  ;;  %v416_v49 = vadd.f32 1.0, %v856_v46 }
 0x10b   : > { %v860_v50 = vpop.eup %859  ;;  %869 = vrcp.f32 %v418_v47  ;;  %v419_v51 = vadd.f32 1.0, %v858_v48 }
 0x10c   : > { %871 = vrcp.f32 %v416_v49  ;;  %v417_v52 = vadd.f32 1.0, %v860_v50 }
 0x10d   : > { %873 = vrcp.f32 %v419_v51 }
 0x10e   : > { %875 = vrcp.f32 %v417_v52 }
 0x110   : > { %v862_v53 = vpop.eup %861 }
 0x111   : > { %v864_v54 = vpop.eup %863  ;;  %v422_v55 = vadd.f32 1.0, %v862_v53 }
 0x112   : > { %v866_v56 = vpop.eup %865  ;;  %v420_v57 = vadd.f32 1.0, %v864_v54 }
 0x113   : > { %v868_v58 = vpop.eup %867  ;;  %877 = vrcp.f32 %v422_v55  ;;  %v423_v59 = vadd.f32 1.0, %v866_v56 }
 0x114   : > { %879 = vrcp.f32 %v420_v57  ;;  %v421_v60 = vadd.f32 1.0, %v868_v58 }
 0x115   : > { %v870_v61 = vpop.eup %869  ;;  %881 = vrcp.f32 %v423_v59 }
 0x116   : > { %v872_v62 = vpop.eup %871  ;;  %883 = vrcp.f32 %v421_v60  ;;  %v442_v1 = vmul.f32 %v870_v61, %v370_v22 }
 0x117   : > { %v874_v63 = vpop.eup %873  ;;  %v440_v3 = vmul.f32 %v872_v62, %v362_v24 }
 0x118   : > { %v876_v0 = vpop.eup %875  ;;  %v443_v2 = vmul.f32 %v874_v63, %v373_v27 }
 0x119   : > { %v441_v4 = vmul.f32 %v876_v0, %v365_v30 }
 0x11a   : > { %v449_v5 = vpack.c.bf16 %v443_v2, %v442_v1 }
 0x11b   : > { %v448_v6 = vpack.c.bf16 %v441_v4, %v440_v3 }
 0x11d   : > { %v878_v7 = vpop.eup %877  ;;  %817 = vmatprep.mubr.bf16.mxu1 %v448_v6 }
 0x11e   : > { %v880_v8 = vpop.eup %879  ;;  %818 = vmatmul.mubr.bf16.vlgmr.msra.gmra.mrb[0].mxu1 %v449_v5  ;;  %v446_v11 = vmul.f32 %v878_v7, %v386_v34 }
 0x11f   : > { %v882_v9 = vpop.eup %881  ;;  %v444_v13 = vmul.f32 %v880_v8, %v378_v36 }
 0x120   : > { %v884_v10 = vpop.eup %883  ;;  %v447_v12 = vmul.f32 %v882_v9, %v389_v39 }
 0x121   : > { %v445_v14 = vmul.f32 %v884_v10, %v381_v42 }
 0x122   : > { %v451_v15 = vpack.c.bf16 %v447_v12, %v446_v11 }
 0x123   : > { %v450_v16 = vpack.c.bf16 %v445_v14, %v444_v13 }
 0x125   : > { %821 = vmatprep.mubr.bf16.mxu1 %v450_v16 }
 0x126   : > { %822 = vmatmul.mubr.bf16.gmra.mrb[4].mxu1 %v451_v15 }
 0x1f1   : > { %v819_v18 = vpop.f32.mrb[0].mxu1 }
 0x1f2   : > { %v566_v19 = vadd.f32 %v819_v18, %v734_v17  ;;  %v557_v20 = vpop.f32.mrb[1].mxu1 }
 0x1f3   : > { %v558_v21 = vadd.f32 %v734_v17, %v557_v20  ;;  %v820_v22 = vpop.f32.mrb[2].mxu1 }
 0x1f4   : > { %v745_v23 = vmul.f32 -1.442695, %v566_v19  ;;  %v569_v24 = vadd.f32 %v820_v22, %v734_v17  ;;  %v560_v25 = vpop.f32.mrb[3].mxu1 }
 0x1f5   : > { %v743_v26 = vmul.f32 -1.442695, %v558_v21  ;;  %v561_v27 = vadd.f32 %v734_v17, %v560_v25 }
 0x1f6   : > { %885 = vpow2.f32 %v745_v23  ;;  %v746_v28 = vmul.f32 -1.442695, %v569_v24 }
 0x1f7   : > { %887 = vpow2.f32 %v743_v26  ;;  %v744_v29 = vmul.f32 -1.442695, %v561_v27 }
 0x1f8   : > { %889 = vpow2.f32 %v746_v28 }
 0x1f9   : > { %891 = vpow2.f32 %v744_v29  ;;  %v823_v30 = vpop.f32.mrb[4].mxu1 }
 0x1fa   : > { %v582_v31 = vadd.f32 %v823_v30, %v734_v17  ;;  %v573_v32 = vpop.f32.mrb[5].mxu1 }
 0x1fb   : > { %v574_v33 = vadd.f32 %v734_v17, %v573_v32  ;;  %v824_v34 = vpop.f32.mrb[6].mxu1 }
 0x1fc   : > { %v749_v35 = vmul.f32 -1.442695, %v582_v31  ;;  %v585_v36 = vadd.f32 %v824_v34, %v734_v17  ;;  %v576_v37 = vpop.f32.mrb[7].mxu1 }
 0x1fd   : > { %v747_v38 = vmul.f32 -1.442695, %v574_v33  ;;  %v577_v39 = vadd.f32 %v734_v17, %v576_v37 }
 0x1fe   : > { %893 = vpow2.f32 %v749_v35  ;;  %v750_v40 = vmul.f32 -1.442695, %v585_v36 }
 0x1ff   : > { %895 = vpow2.f32 %v747_v38  ;;  %v748_v41 = vmul.f32 -1.442695, %v577_v39 }
 0x200   : > { %v886_v42 = vpop.eup %885  ;;  %897 = vpow2.f32 %v750_v40 }
 0x201   : > { %v888_v43 = vpop.eup %887  ;;  %v614_v44 = vadd.f32 1.0, %v886_v42  ;;  %899 = vpow2.f32 %v748_v41 }
 0x202   : > { %v890_v45 = vpop.eup %889  ;;  %v612_v46 = vadd.f32 1.0, %v888_v43 }
 0x203   : > { %v892_v47 = vpop.eup %891  ;;  %v615_v48 = vadd.f32 1.0, %v890_v45 }
 0x204   : > { %901 = vrcp.f32 %v612_v46  ;;  %v613_v49 = vadd.f32 1.0, %v892_v47 }
 0x205   : > { %903 = vrcp.f32 %v614_v44 }
 0x206   : > { %905 = vrcp.f32 %v613_v49 }
 0x207   : > { %907 = vrcp.f32 %v615_v48 }
 0x208   : > { %v894_v50 = vpop.eup %893 }
 0x209   : > { %v896_v51 = vpop.eup %895  ;;  %v618_v52 = vadd.f32 1.0, %v894_v50 }
 0x20a   : > { %v898_v53 = vpop.eup %897  ;;  %v616_v54 = vadd.f32 1.0, %v896_v51 }
 0x20b   : > { %v900_v55 = vpop.eup %899  ;;  %v619_v56 = vadd.f32 1.0, %v898_v53 }
 0x20c   : > { %909 = vrcp.f32 %v616_v54  ;;  %v617_v57 = vadd.f32 1.0, %v900_v55 }
 0x20d   : > { %911 = vrcp.f32 %v618_v52 }
 0x20e   : > { %v902_v58 = vpop.eup %901  ;;  %913 = vrcp.f32 %v617_v57 }
 0x20f   : > { %v904_v59 = vpop.eup %903  ;;  %915 = vrcp.f32 %v619_v56  ;;  %v636_v61 = vmul.f32 %v902_v58, %v558_v21 }
 0x210   : > { %v906_v60 = vpop.eup %905  ;;  %v638_v0 = vmul.f32 %v904_v59, %v566_v19 }
 0x211   : > { %v637_v62 = vmul.f32 %v906_v60, %v561_v27  ;;  %v908_v63 = vpop.eup %907 }
 0x212   : > { %v639_v2 = vmul.f32 %v908_v63, %v569_v24 }
 0x213   : > { %v644_v1 = vadd.f32 %v637_v62, %v636_v61 }
 0x215   : > { %v645_v3 = vadd.f32 %v644_v1, %v638_v0 }
 0x216   : > { %v910_v4 = vpop.eup %909 }
 0x217   : > { %v912_v5 = vpop.eup %911  ;;  %v640_v6 = vmul.f32 %v910_v4, %v574_v33  ;;  %v646_v7 = vadd.f32 %v645_v3, %v639_v2 }
 0x218   : > { %v914_v8 = vpop.eup %913  ;;  %v642_v12 = vmul.f32 %v912_v5, %v582_v31 }
 0x219   : > { %v647_v9 = vadd.f32 %v646_v7, %v640_v6  ;;  %v641_v10 = vmul.f32 %v914_v8, %v577_v39  ;;  %v916_v11 = vpop.eup %915 }
 0x21a   : > { %v643_v14 = vmul.f32 %v916_v11, %v585_v36 }
 0x21b   : > { %v648_v13 = vadd.f32 %v647_v9, %v641_v10 }
 0x21d   : > { %v649_v15 = vadd.f32 %v648_v13, %v642_v12 }
 0x21f   : > { %v650_v16 = vadd.f32 %v649_v15, %v643_v14 }
 0x221   : > { %v651_v17 = vrot.slane %v650_v16, 4 }
 0x223   : > { %v652_v18 = vadd.f32 %v651_v17, %v650_v16 }
 0x225   : > { %v653_v19 = vrot.slane %v652_v18, 2 }
 0x227   : > { %v654_v20 = vadd.f32 %v653_v19, %v652_v18 }
 0x229   : > { %v655_v21 = vrot.slane %v654_v20, 1 }
 0x22b   : > { %v656_v22 = vadd.f32 %v655_v21, %v654_v20 }
 0x22d   : > { %v657_v23 = vmul.f32 0.015625, %v656_v22 }
 0x22f   : > { %658 = vst [vmem:[%s222_s15] sm:$0x1] %v657_v23 }
 0x230 PF: > { %s15_s18 = sadd.s32 1, %s923_s18  }
 0x231   : > { %p12_p5 = scmp.ge.s32.totalorder %s15_s18, 4  }
 0x233   :  { %14 = sbr.rel (!%p12_p5) target bundleno = 1 (0x1), region = 70 }

// kernel: custom_effnet_forward.3
= control target key start
LH: loop header
LB: loop body
LE: loop exit
PB: predicated region body
PF: predicated region fallthrough
CT: control target
= control target key end

     0   :  { %v382_v1 = vmov 0.0   ;;  %vm383_vm0 = vmmov 0   ;;  %s484_s0 = inlined_call_operand.vmem [shape: f32[2,128], index: 0, kind: input, shape index: {}]   ;;  %s485_s1 = inlined_call_operand.vmem [shape: bf16[128,128], index: 1, kind: input, shape index: {}]   ;;  %s486_s2 = inlined_call_operand.vmem [shape: f32[1,128], index: 2, kind: input, shape index: {}]   ;;  %s487_s3 = inlined_call_operand.vmem [shape: bf16[128,128], index: 3, kind: input, shape index: {}]   ;;  %s488_s4 = inlined_call_operand.vmem [shape: f32[1,128], index: 4, kind: input, shape index: {}]   ;;  %s489_s5 = inlined_call_operand.hbm [shape: f32[2,128], index: 5, kind: output, shape index: {}]  }
   0x1   :  { %v342_v0 = vld [vmem:[%s485_s1] sm:$0xff]   ;;  %299 = vmatprep.subr.bf16.mxu0 %v382_v1  ;;  %319 = vmatprep.subr.bf16.mxu1 %v382_v1  ;;  %v343_v2 = vld [vmem:[%s485_s1 + $0x8] sm:$0xff]   ;;  %v344_v3 = vld [vmem:[%s485_s1 + $0x10] sm:$0xff]  }
   0x2   :  { %300 = vmatpush3.bf16.msra.mxu0 %v342_v0  ;;  %315 = vmatprep.mubr.msk.bf16.mxu0 %vm383_vm0, %v382_v1  ;;  %v350_v4 = vld [vmem:[%s487_s3] sm:$0xff]   ;;  %v345_v5 = vld [vmem:[%s485_s1 + $0x18] sm:$0xff]   ;;  %v351_v6 = vld [vmem:[%s487_s3 + $0x8] sm:$0xff]  }
   0x3   :  { %301 = vmatprep.subr.bf16.mxu0 %v382_v1  ;;  %335 = vmatprep.mubr.msk.bf16.mxu1 %vm383_vm0, %v382_v1  ;;  %v346_v7 = vld [vmem:[%s485_s1 + $0x20] sm:$0xff]   ;;  %v352_v8 = vld [vmem:[%s487_s3 + $0x10] sm:$0xff]  }
   0x4   :  { %320 = vmatpush3.bf16.msra.mxu1 %v350_v4 }
   0x5   :  { %321 = vmatprep.subr.bf16.mxu1 %v382_v1 }
   0x6   :  { %302 = vmatpush3.bf16.msra.mxu0 %v343_v2 }
   0x7   :  { %303 = vmatprep.subr.bf16.mxu0 %v382_v1 }
   0x8   :  { %322 = vmatpush3.bf16.msra.mxu1 %v351_v6 }
   0x9   :  { %323 = vmatprep.subr.bf16.mxu1 %v382_v1 }
   0xa   :  { %304 = vmatpush3.bf16.msra.mxu0 %v344_v3 }
   0xb   :  { %305 = vmatprep.subr.bf16.mxu0 %v382_v1 }
   0xe   :  { %306 = vmatpush3.bf16.msra.mxu0 %v345_v5 }
   0xf   :  { %307 = vmatprep.subr.bf16.mxu0 %v382_v1 }
  0x10   :  { %10 = vsyncpa [#allocation3], 0  ;;  %v347_v9 = vld [vmem:[%s485_s1 + $0x28] sm:$0xff]   ;;  %324 = vmatpush3.bf16.msra.mxu1 %v352_v8  ;;  %v353_v10 = vld [vmem:[%s487_s3 + $0x18] sm:$0xff]   ;;  %s384_s29 = smov [#allocation2]  }
  0x11   :  { %325 = vmatprep.subr.bf16.mxu1 %v382_v1  ;;  %v348_v11 = vld [vmem:[%s485_s1 + $0x30] sm:$0xff]   ;;  %v354_v12 = vld [vmem:[%s487_s3 + $0x20] sm:$0xff]   ;;  %v349_v13 = vld [vmem:[%s485_s1 + $0x38] sm:$0xff]   ;;  %s255_s30 = sshll.u32 %s384_s29, 4  ;;  %s256_s30 = int_to_ptr.vmem [resolvable:$true] %s255_s30 }
  0x12   :  { %308 = vmatpush3.bf16.msra.mxu0 %v346_v7  ;;  %v22_v14 = vld [vmem:[%s484_s0] sm:$0x3]  ;;  %v355_v15 = vld [vmem:[%s487_s3 + $0x28] sm:$0xff]   ;;  %v356_v17 = vld [vmem:[%s487_s3 + $0x30] sm:$0xff]   ;;  %p363_p1 = scmp.lt.s32.totalorder %s256_s30, %s256_s30 }
  0x13   :  { %309 = vmatprep.subr.bf16.mxu0 %v382_v1  ;;  %v23_v16 = vpack.c.bf16 %v22_v14, %v22_v14  ;;  %v357_v18 = vld [vmem:[%s487_s3 + $0x38] sm:$0xff]   ;;  %v263_v19 = vld [vmem:[%s486_s2] ss:$0 sm:$0xff]  ;;  %s358_s2 = scalar_lea.vmem %s256_s30, 32 }
  0x14   :  { %326 = vmatpush3.bf16.msra.mxu1 %v353_v10  ;;  %v272_v27 = vld [vmem:[%s488_s4] ss:$0 sm:$0xff]  ;;  %p359_p0 = scmp.ne.s32.totalorder %s256_s30, %s358_s2  ;;  %p364_p2 = scmp.lt.s32.totalorder %s358_s2, %s358_s2 }
  0x15   :  { %327 = vmatprep.subr.bf16.mxu1 %v382_v1 }
  0x16   :  { %310 = vmatpush3.bf16.msra.mxu0 %v347_v9  ;;  %p365_p3 = por %p364_p2, %p363_p1 }
  0x17   :  { %311 = vmatprep.subr.bf16.mxu0 %v382_v1 }
  0x18   :  { %328 = vmatpush3.bf16.msra.mxu1 %v354_v12  ;;  %p366_p4 = pnand %p365_p3, %p359_p0 }
  0x19   :  { %329 = vmatprep.subr.bf16.mxu1 %v382_v1 }
  0x1a   :  { %312 = vmatpush3.bf16.msra.mxu0 %v348_v11 }
  0x1b   :  { %313 = vmatprep.subr.bf16.mxu0 %v382_v1 }
  0x1c   :  { %330 = vmatpush3.bf16.msra.mxu1 %v355_v15 }
  0x1d   :  { %331 = vmatprep.subr.bf16.mxu1 %v382_v1 }
  0x1e   :  { %314 = vmatpush3.bf16.msra.mxu0 %v349_v13 }
  0x20   :  { %332 = vmatpush3.bf16.msra.mxu1 %v356_v17 }
  0x21   :  { %316 = vmatmul.mubr.bf16.vlgmr.msra.gmra.mrb[0].mxu0 %v23_v16  ;;  %333 = vmatprep.subr.bf16.mxu1 %v382_v1 }
  0x24   :  { %334 = vmatpush3.bf16.msra.mxu1 %v357_v18 }
  0xf4   :  { %v129_v20 = vpop.f32.mrb[0].mxu0 }
  0xf5   :  { %v130_v21 = vadd.f32 %v263_v19, %v129_v20  ;;  %v317_v22 = vpop.f32.mrb[1].mxu0 }
  0xf6   :  { %v132_v23 = vpop.f32.mrb[2].mxu0 }
  0xf7   :  { %v135_v24 = vmax.f32 %v130_v21, 0.0  ;;  %v318_v25 = vpop.f32.mrb[3].mxu0 }
  0xf9   :  { %v136_v26 = vpack.c.bf16 %v135_v24, %v135_v24 }
  0xfb   :  { %336 = vmatmul.mubr.bf16.vlgmr.msra.gmra.mrb[0].mxu1 %v136_v26 }
 0x1ce   :  { %v242_v28 = vpop.f32.mrb[0].mxu1 }
 0x1cf   :  { %v243_v29 = vadd.f32 %v272_v27, %v242_v28  ;;  %v337_v30 = vpop.f32.mrb[1].mxu1 }
 0x1d0   :  { %v245_v31 = vpop.f32.mrb[2].mxu1 }
 0x1d1   :  { %248 = vst [vmem:[#allocation2] sm:$0x3] %v243_v29  ;;  %v338_v32 = vpop.f32.mrb[3].mxu1 }
 0x1d2   :  { %369 = shalt.err (!%p366_p4)
}
 0x1d3   :  { %s370_s4 = scalar_lea.hbm %s489_s5, 32 }
 0x1d4   :  { %p371_p5 = scmp.ne.s32.totalorder %s489_s5, %s370_s4  ;;  %p374_p6 = scmp.lt.u32.totalorder %s370_s4, %s489_s5 }
 0x1d6   :  { %p376_p7 = pnand %p374_p6, %p371_p5 }
 0x1d8   :  { %379 = shalt.err (!%p376_p7)
}
 0x1d9   :  { %258 = dma.vmem_to_hbm [thread:$0]  %s256_s30, 32, %s489_s5, [#allocation3]  }
 0x1da   :  { %380 = dma.done.wait [#allocation3], 32  }
 0x1db   :  { %381 = vsyncadd [#allocation3], 4294967264 }
 0x1dc   :  { %262 = vsyncpa [#allocation3], 1 }

</bundles_post_ra>
